<compile_context>
chip_gen: v7x
topology: tpu7x:2x2x1
jax: 0.10.0
libtpu: 0.0.40
codegen_flags: <defaults>
</compile_context>

<pallas_src>
import math
import functools

import jax
import jax.numpy as jnp
from jax.experimental import pallas as pl
from jax.experimental.pallas import tpu as pltpu

_LANE = 128
# Target bytes per input block (dtype-aware row count is derived from this):
#   f32  -> 8192 rows ≈ 4 MiB,  bf16 -> 16384 rows ≈ 4 MiB.
_TARGET_BLOCK_BYTES = 4 << 20


def _nll_kernel(logp_ref, logdet_ref, out_ref, acc_lp, acc_ld, *,
                inv_scale, loss_const, valid_rows, needs_mask):
    """logp_ref / logdet_ref: [block_rows, 128] tiles in their native dtype.

    acc_lp / acc_ld: [1, 128] f32 per-lane running sums (VMEM scratch,
    persistent across the sequential reduction grid).
    out_ref: [1, 128] f32 lane-dense output; lanes 0..2 hold
    (loss_mean, log_p_mean, logdet_mean).
    """
    step = pl.program_id(0)

    @pl.when(step == 0)
    def _():
        acc_lp[...] = jnp.zeros_like(acc_lp)
        acc_ld[...] = jnp.zeros_like(acc_ld)

    lp = logp_ref[...].astype(jnp.float32)      # [block_rows, 128]
    ld = logdet_ref[...].astype(jnp.float32)

    if needs_mask:
        # Last block may overhang the [rows, 128] array; its contents are
        # undefined, so zero overhanging rows before accumulating.  For
        # non-final steps the mask is all-true (cheap VALU filler in a
        # memory-bound kernel).
        block_rows = logp_ref.shape[0]
        row_idx = step * block_rows + jax.lax.broadcasted_iota(
            jnp.int32, (block_rows, 1), 0)
        keep = row_idx < valid_rows
        lp = jnp.where(keep, lp, 0.0)
        ld = jnp.where(keep, ld, 0.0)

    acc_lp[...] += jnp.sum(lp, axis=0, keepdims=True)   # per-lane partial sums
    acc_ld[...] += jnp.sum(ld, axis=0, keepdims=True)

    @pl.when(step == pl.num_programs(0) - 1)
    def _():
        # Final cross-lane reduction; zero padding contributes nothing and the
        # means divide by the true batch size via inv_scale.
        logp_mean = jnp.sum(acc_lp[...], axis=-1, keepdims=True) * inv_scale
        logdet_mean = jnp.sum(acc_ld[...], axis=-1, keepdims=True) * inv_scale
        loss_mean = loss_const - logp_mean - logdet_mean
        lane = jax.lax.broadcasted_iota(jnp.int32, (1, _LANE), 1)
        out_ref[...] = jnp.where(
            lane == 0, loss_mean,
            jnp.where(lane == 1, logp_mean,
                      jnp.where(lane == 2, logdet_mean, 0.0))).astype(jnp.float32)


def nll_loss(log_p, logdet, image_size=(728, 128), n_bins=256,
             max_block_rows=None):
    """Pallas implementation of NLLLoss.forward.

    Args:
      log_p:  [B] array (sum of log-likelihood terms per sample).
      logdet: [B] array (log-determinant per sample).
    Returns:
      (loss_mean, log_p_mean, logdet_mean) — three float32 scalars,
      matching the PyTorch module's return tuple.
    """
    n_pixel = image_size[0] * image_size[1] * 3
    denom = math.log(2.0) * n_pixel
    B = log_p.shape[0]

    inv_scale = 1.0 / (denom * B)
    # -(-log(n_bins) * n_pixel) / denom  ==  log2(n_bins)
    loss_const = (math.log(n_bins) * n_pixel) / denom

    rows = pl.cdiv(B, _LANE)
    b_aligned = rows * _LANE

    def to_rows(x):
        if b_aligned != B:
            # Only for B % 128 != 0 (small / ragged batches); the pad values are
            # zero so they do not bias the sums.  Aligned case is zero-copy.
            x = jnp.pad(x, (0, b_aligned - B))
        return x.reshape(rows, _LANE)

    lp2 = to_rows(log_p)
    ld2 = to_rows(logdet)

    # Dtype-aware block sizing: keep the per-input block byte size constant.
    if max_block_rows is None:
        itemsize = max(jnp.dtype(log_p.dtype).itemsize,
                       jnp.dtype(logdet.dtype).itemsize)
        max_block_rows = max(8, _TARGET_BLOCK_BYTES // (_LANE * itemsize))

    if rows <= max_block_rows:
        block_rows, grid_n = rows, 1          # full-dim block (exempt from x8)
    else:
        # Balance rows across grid steps; round block up to a sublane multiple.
        grid_n = pl.cdiv(rows, max_block_rows)
        block_rows = ((pl.cdiv(rows, grid_n) + 7) // 8) * 8
        grid_n = pl.cdiv(rows, block_rows)

    needs_mask = (grid_n * block_rows != rows)

    kernel = functools.partial(
        _nll_kernel, inv_scale=inv_scale, loss_const=loss_const,
        valid_rows=rows, needs_mask=needs_mask)

    out = pl.pallas_call(
        kernel,
        out_shape=jax.ShapeDtypeStruct((1, _LANE), jnp.float32),
        grid_spec=pltpu.PrefetchScalarGridSpec(
            num_scalar_prefetch=0,
            grid=(grid_n,),
            in_specs=[pl.BlockSpec((block_rows, _LANE), lambda i: (i, 0)),
                      pl.BlockSpec((block_rows, _LANE), lambda i: (i, 0))],
            out_specs=pl.BlockSpec((1, _LANE), lambda i: (0, 0)),
            scratch_shapes=[pltpu.VMEM((1, _LANE), jnp.float32),
                            pltpu.VMEM((1, _LANE), jnp.float32)],
        ),
        compiler_params=pltpu.CompilerParams(
            dimension_semantics=("arbitrary",)),
    )(lp2, ld2)

    return out[0, 0], out[0, 1], out[0, 2]


def _reference(log_p, logdet, image_size=(728, 128), n_bins=256):
    n_pixel = image_size[0] * image_size[1] * 3
    loss = -math.log(n_bins) * n_pixel
    loss = loss + logdet.astype(jnp.float32) + log_p.astype(jnp.float32)
    denom = math.log(2.0) * n_pixel
    return ((-loss / denom).mean(),
            (log_p.astype(jnp.float32) / denom).mean(),
            (logdet.astype(jnp.float32) / denom).mean())


if __name__ == "__main__":
    key = jax.random.PRNGKey(0)

    def check(B, **kw):
        k1, k2 = jax.random.split(jax.random.fold_in(key, B))
        # Plausible magnitudes for a flow model's log_p / logdet terms.
        log_p = jax.random.normal(k1, (B,), dtype=jnp.float32) * 1e4 - 3e5
        logdet = jax.random.normal(k2, (B,), dtype=jnp.float32) * 1e3 + 5e4
        out = jax.block_until_ready(nll_loss(log_p, logdet, **kw))
        ref = _reference(log_p, logdet)
        for a, b in zip(out, ref):
            assert jnp.allclose(a, b, rtol=1e-4, atol=1e-4), (B, a, b)

    check(8)                           # ragged batch: lane-pad path
    check(384)                         # aligned batch: zero-copy reshape, no pad
    check(5120, max_block_rows=16)     # multi-block grid with overhang masking
    print("KERNEL_OK")
</pallas_src>

<mosaic_0001>
module attributes {stable_mosaic.version = 11 : i64} {
  func.func @_nll_kernel(%arg0: i32, %arg1: memref<1x128xf32, #tpu.memory_space<vmem>>, %arg2: memref<1x128xf32, #tpu.memory_space<vmem>>, %arg3: memref<1x128xf32, #tpu.memory_space<vmem>>, %arg4: memref<1x128xf32, #tpu.memory_space<vmem>>, %arg5: memref<1x128xf32, #tpu.memory_space<vmem>>) attributes {dimension_semantics = [#tpu.dimension_semantics<arbitrary>], iteration_bounds = array<i64: 1>, scalar_prefetch = 0 : i64, scratch_operands = 2 : i64, tpu.core_type = #tpu.core_type<tc>, window_params = [{transform_indices = @transform_0, window_bounds = array<i64: 1, 128>}, {transform_indices = @transform_1, window_bounds = array<i64: 1, 128>}, {pipeline_mode = #tpu.pipeline_mode<synchronous>, transform_indices = @transform_2, window_bounds = array<i64: 1, 128>}]} {
    %c0_i32 = arith.constant 0 : i32
    %0 = arith.cmpi eq, %arg0, %c0_i32 : i32
    %1 = arith.extui %0 : i1 to i32
    %c0_i32_0 = arith.constant 0 : i32
    %2 = arith.cmpi ne, %1, %c0_i32_0 : i32
    scf.if %2 {
      %cst_15 = arith.constant 0.000000e+00 : f32
      %18 = vector.broadcast %cst_15 : f32 to vector<1x128xf32>
      %c0_16 = arith.constant 0 : index
      %c0_17 = arith.constant 0 : index
      %19 = vector.load %arg4[%c0_16, %c0_17] : memref<1x128xf32, #tpu.memory_space<vmem>>, vector<1x128xf32>
      tpu.vector_store %arg4[%c0_16, %c0_17], %18 {strides = array<i32>} : memref<1x128xf32, #tpu.memory_space<vmem>>, vector<1x128xf32>,
      %cst_18 = arith.constant 0.000000e+00 : f32
      %20 = vector.broadcast %cst_18 : f32 to vector<1x128xf32>
      %c0_19 = arith.constant 0 : index
      %c0_20 = arith.constant 0 : index
      %21 = vector.load %arg5[%c0_19, %c0_20] : memref<1x128xf32, #tpu.memory_space<vmem>>, vector<1x128xf32>
      tpu.vector_store %arg5[%c0_19, %c0_20], %20 {strides = array<i32>} : memref<1x128xf32, #tpu.memory_space<vmem>>, vector<1x128xf32>,
    } else {
    }
    %c0 = arith.constant 0 : index
    %c0_1 = arith.constant 0 : index
    %3 = vector.load %arg1[%c0, %c0_1] : memref<1x128xf32, #tpu.memory_space<vmem>>, vector<1x128xf32>
    %c0_2 = arith.constant 0 : index
    %c0_3 = arith.constant 0 : index
    %4 = vector.load %arg2[%c0_2, %c0_3] : memref<1x128xf32, #tpu.memory_space<vmem>>, vector<1x128xf32>
    %c0_4 = arith.constant 0 : index
    %c0_5 = arith.constant 0 : index
    %5 = vector.load %arg4[%c0_4, %c0_5] : memref<1x128xf32, #tpu.memory_space<vmem>>, vector<1x128xf32>
    %cst = arith.constant dense<0.000000e+00> : vector<128xf32>
    %6 = vector.multi_reduction <add>, %3, %cst [0] : vector<1x128xf32> to vector<128xf32>
    %7 = vector.shape_cast %6 : vector<128xf32> to vector<1x128xf32>
    %8 = arith.addf %5, %7 : vector<1x128xf32>
    %c0_6 = arith.constant 0 : index
    %c0_7 = arith.constant 0 : index
    %9 = vector.load %arg4[%c0_6, %c0_7] : memref<1x128xf32, #tpu.memory_space<vmem>>, vector<1x128xf32>
    tpu.vector_store %arg4[%c0_6, %c0_7], %8 {strides = array<i32>} : memref<1x128xf32, #tpu.memory_space<vmem>>, vector<1x128xf32>,
    %c0_8 = arith.constant 0 : index
    %c0_9 = arith.constant 0 : index
    %10 = vector.load %arg5[%c0_8, %c0_9] : memref<1x128xf32, #tpu.memory_space<vmem>>, vector<1x128xf32>
    %cst_10 = arith.constant dense<0.000000e+00> : vector<128xf32>
    %11 = vector.multi_reduction <add>, %4, %cst_10 [0] : vector<1x128xf32> to vector<128xf32>
    %12 = vector.shape_cast %11 : vector<128xf32> to vector<1x128xf32>
    %13 = arith.addf %10, %12 : vector<1x128xf32>
    %c0_11 = arith.constant 0 : index
    %c0_12 = arith.constant 0 : index
    %14 = vector.load %arg5[%c0_11, %c0_12] : memref<1x128xf32, #tpu.memory_space<vmem>>, vector<1x128xf32>
    tpu.vector_store %arg5[%c0_11, %c0_12], %13 {strides = array<i32>} : memref<1x128xf32, #tpu.memory_space<vmem>>, vector<1x128xf32>,
    %c0_i32_13 = arith.constant 0 : i32
    %15 = arith.cmpi eq, %arg0, %c0_i32_13 : i32
    %16 = arith.extui %15 : i1 to i32
    %c0_i32_14 = arith.constant 0 : i32
    %17 = arith.cmpi ne, %16, %c0_i32_14 : i32
    scf.if %17 {
      %c0_15 = arith.constant 0 : index
      %c0_16 = arith.constant 0 : index
      %18 = vector.load %arg4[%c0_15, %c0_16] : memref<1x128xf32, #tpu.memory_space<vmem>>, vector<1x128xf32>
      %cst_17 = arith.constant dense<0.000000e+00> : vector<1xf32>
      %19 = vector.multi_reduction <add>, %18, %cst_17 [1] : vector<1x128xf32> to vector<1xf32>
      %20 = vector.shape_cast %19 : vector<1xf32> to vector<1x1xf32>
      %cst_18 = arith.constant 6.45092427E-7 : f32
      %21 = vector.broadcast %cst_18 : f32 to vector<1x1xf32>
      %22 = arith.mulf %20, %21 : vector<1x1xf32>
      %c0_19 = arith.constant 0 : index
      %c0_20 = arith.constant 0 : index
      %23 = vector.load %arg5[%c0_19, %c0_20] : memref<1x128xf32, #tpu.memory_space<vmem>>, vector<1x128xf32>
      %cst_21 = arith.constant dense<0.000000e+00> : vector<1xf32>
      %24 = vector.multi_reduction <add>, %23, %cst_21 [1] : vector<1x128xf32> to vector<1xf32>
      %25 = vector.shape_cast %24 : vector<1xf32> to vector<1x1xf32>
      %cst_22 = arith.constant 6.45092427E-7 : f32
      %26 = vector.broadcast %cst_22 : f32 to vector<1x1xf32>
      %27 = arith.mulf %25, %26 : vector<1x1xf32>
      %cst_23 = arith.constant 8.000000e+00 : f32
      %28 = vector.broadcast %cst_23 : f32 to vector<1x1xf32>
      %29 = arith.subf %28, %22 : vector<1x1xf32>
      %30 = arith.subf %29, %27 : vector<1x1xf32>
      %31 = tpu.iota {dimensions = array<i32: 1>} : vector<1x128xi32>
      %c0_i32_24 = arith.constant 0 : i32
      %32 = vector.broadcast %c0_i32_24 : i32 to vector<1x128xi32>
      %33 = arith.cmpi eq, %31, %32 : vector<1x128xi32>
      %c1_i32 = arith.constant 1 : i32
      %34 = vector.broadcast %c1_i32 : i32 to vector<1x128xi32>
      %35 = arith.cmpi eq, %31, %34 : vector<1x128xi32>
      %c2_i32 = arith.constant 2 : i32
      %36 = vector.broadcast %c2_i32 : i32 to vector<1x128xi32>
      %37 = arith.cmpi eq, %31, %36 : vector<1x128xi32>
      %cst_25 = arith.constant 0.000000e+00 : f32
      %38 = vector.shape_cast %27 : vector<1x1xf32> to vector<1x1xf32>
      %39 = vector.broadcast %38 : vector<1x1xf32> to vector<1x128xf32>
      %40 = vector.broadcast %cst_25 : f32 to vector<1x128xf32>
      %41 = arith.select %37, %39, %40 : vector<1x128xi1>, vector<1x128xf32>
      %42 = vector.shape_cast %22 : vector<1x1xf32> to vector<1x1xf32>
      %43 = vector.broadcast %42 : vector<1x1xf32> to vector<1x128xf32>
      %44 = arith.select %35, %43, %41 : vector<1x128xi1>, vector<1x128xf32>
      %45 = vector.shape_cast %30 : vector<1x1xf32> to vector<1x1xf32>
      %46 = vector.broadcast %45 : vector<1x1xf32> to vector<1x128xf32>
      %47 = arith.select %33, %46, %44 : vector<1x128xi1>, vector<1x128xf32>
      %c0_26 = arith.constant 0 : index
      %c0_27 = arith.constant 0 : index
      %48 = vector.load %arg3[%c0_26, %c0_27] : memref<1x128xf32, #tpu.memory_space<vmem>>, vector<1x128xf32>
      tpu.vector_store %arg3[%c0_26, %c0_27], %47 {strides = array<i32>} : memref<1x128xf32, #tpu.memory_space<vmem>>, vector<1x128xf32>,
    } else {
    }
    return
  }
  func.func @transform_0(%arg0: i32) -> (i32, i32) {
    %c0_i32 = arith.constant 0 : i32
    %c0_i32_0 = arith.constant 0 : i32
    return %arg0, %c0_i32 : i32, i32
  }
  func.func @transform_1(%arg0: i32) -> (i32, i32) {
    %c0_i32 = arith.constant 0 : i32
    %c0_i32_0 = arith.constant 0 : i32
    return %arg0, %c0_i32 : i32, i32
  }
  func.func @transform_2(%arg0: i32) -> (i32, i32) {
    %c0_i32 = arith.constant 0 : i32
    %c0_i32_0 = arith.constant 0 : i32
    %c0_i32_1 = arith.constant 0 : i32
    return %c0_i32, %c0_i32_0 : i32, i32
  }
}

</mosaic_0001>

<bundles_post_ra>
// kernel: tpu_custom_call.1
= control target key start
LH: loop header
LB: loop body
LE: loop exit
PB: predicated region body
PF: predicated region fallthrough
CT: control target
= control target key end

     0   :  { %7 = vsyncpa [#allocation5], 0  ;;  %s176_s0 = inlined_call_operand.hbm [shape: f32[1,128], index: 0, kind: input, shape index: {}]   ;;  %s177_s1 = inlined_call_operand.vmem [shape: f32[1,128], index: 1, kind: input, shape index: {}]   ;;  %s178_s2 = inlined_call_operand.hbm [shape: f32[1,128], index: 2, kind: output, shape index: {}]  }
   0x1   :  { %8 = vsyncpa [#allocation6], 0  ;;  %s131_s9 = smov [#allocation4]   ;;  %s83_s13 = scalar_lea.hbm %s176_s0, 16 }
   0x2   :  { %s15_s10 = sshll.u32 %s131_s9, 4  ;;  %p84_p0 = scmp.ne.s32.totalorder %s176_s0, %s83_s13  ;;  %s16_s10 = int_to_ptr.vmem [resolvable:$true] %s15_s10 }
   0x3   :  { %p87_p1 = scmp.lt.u32.totalorder %s83_s13, %s176_s0 }
   0x5   :  { %p89_p2 = pnand %p87_p1, %p84_p0 }
   0x7   :  { %92 = shalt.err (!%p89_p2)
}
   0x8   :  { %s93_s18 = scalar_lea.vmem %s16_s10, 16  ;;  %s97_s19 = scalar_lea.vmem %s16_s10, 32 }
   0x9   :  { %p94_p3 = scmp.ne.s32.totalorder %s16_s10, %s93_s18  ;;  %p98_p4 = scmp.lt.s32.totalorder %s16_s10, %s16_s10 }
   0xa   :  { %p99_p5 = scmp.lt.s32.totalorder %s97_s19, %s93_s18 }
   0xc   :  { %p100_p6 = por %p99_p5, %p98_p4 }
   0xe   :  { %p101_p7 = pnand %p100_p6, %p94_p3 }
  0x10   :  { %104 = shalt.err (!%p101_p7)
}
  0x11   :  { %18 = dma.hbm_to_vmem [thread:$0]  %s176_s0, 16, %s16_s10, [#allocation5]  }
  0x12   :  { %127 = dma.done.wait [#allocation5], 16  }
  0x13   :  { %128 = vsyncadd [#allocation5], 4294967280  ;;  %v132_v0 = vmov 0.0   ;;  %v30_v1 = vld [vmem:[#allocation4] sm:$0x1]  ;;  %vm44_vm0 = vcmask 1040384   ;;  %v56_v11 = vlaneseq }
  0x14   :  { %28 = vst [vmem:[#allocation2] sm:$0x1] %v132_v0  ;;  %29 = vst [vmem:[#allocation3] sm:$0x1] %v132_v0  ;;  %v31_v2 = vld [vmem:[%s177_s1] sm:$0x1] }
  0x15   :  { %v57_v13 = vand.u32 127, %v56_v11  ;;  %s133_s0 = smov [#allocation7]  }
  0x16   :  { %s71_s1 = sshll.u32 %s133_s0, 4  ;;  %s72_s1 = int_to_ptr.vmem [resolvable:$true] %s71_s1 }
  0x17   :  { %vm60_vm1 = vcmp.eq.s32.totalorder %v57_v13, 2  ;;  %vm59_vm2 = vcmp.eq.s32.totalorder %v57_v13, 1  ;;  %vm58_vm3 = vcmp.eq.s32.totalorder %v57_v13, 0  ;;  %s105_s24 = scalar_lea.vmem %s72_s1, 16  ;;  %s109_s25 = scalar_lea.vmem %s72_s1, 32 }
  0x18   :  { %p106_p8 = scmp.ne.s32.totalorder %s72_s1, %s105_s24  ;;  %p110_p9 = scmp.lt.s32.totalorder %s72_s1, %s72_s1 }
  0x19   :  { %p111_p10 = scmp.lt.s32.totalorder %s109_s25, %s105_s24 }
  0x1b   :  { %v32_v3 = vld [vmem:[#allocation2] sm:$0x1]  ;;  %v36_v4 = vld [vmem:[#allocation3] sm:$0x1]  ;;  %p112_p11 = por %p111_p10, %p110_p9 }
  0x1c   :  { %v34_v5 = vadd.f32 %v32_v3, %v30_v1  ;;  %v38_v6 = vadd.f32 %v36_v4, %v31_v2 }
  0x1d   :  { %p113_p12 = pnand %p112_p11, %p106_p8 }
  0x1e   :  { %35 = vst [vmem:[#allocation2] sm:$0x1] %v34_v5  ;;  %39 = vst [vmem:[#allocation3] sm:$0x1] %v38_v6 }
  0x25   :  { %v43_v7 = vld [vmem:[#allocation2] sm:$0x1]  ;;  %v49_v8 = vld [vmem:[#allocation3] sm:$0x1] }
  0x26   :  { %v45_v9 = vsel %vm44_vm0, %v43_v7, 0.0  ;;  %v50_v10 = vsel %vm44_vm0, %v49_v8, 0.0 }
  0x27   :  { %46 = vadd.xlane.f32.xlu0 %v45_v9 }
  0x2b   :  { %51 = vadd.xlane.f32.xlu0 %v50_v10 }
  0xb4   :  { %v47_v12 = vpop.xlane.xlu0 %46 }
  0xb5   :  { %v48_v14 = vmul.f32 6.450924e-07, %v47_v12 }
  0xb7   :  { %v54_v16 = vsub.f32 8.0, %v48_v14 }
  0xb8   :  { %v52_v15 = vpop.xlane.xlu0 %51 }
  0xb9   :  { %v53_v17 = vmul.f32 6.450924e-07, %v52_v15 }
  0xbb   :  { %v55_v18 = vsub.f32 %v54_v16, %v53_v17  ;;  %v61_v19 = vsel %vm60_vm1, %v53_v17, 0.0 }
  0xbc   :  { %v62_v20 = vsel %vm59_vm2, %v48_v14, %v61_v19 }
  0xbd   :  { %v63_v21 = vsel %vm58_vm3, %v55_v18, %v62_v20 }
  0xbe   :  { %64 = vst [vmem:[#allocation7] sm:$0x1] %v63_v21 }
  0xbf   :  { %116 = shalt.err (!%p113_p12)
}
  0xc0   :  { %s117_s28 = scalar_lea.hbm %s178_s2, 16 }
  0xc1   :  { %p118_p13 = scmp.ne.s32.totalorder %s178_s2, %s117_s28  ;;  %p121_p0 = scmp.lt.u32.totalorder %s117_s28, %s178_s2 }
  0xc3   :  { %p123_p1 = pnand %p121_p0, %p118_p13 }
  0xc5   :  { %126 = shalt.err (!%p123_p1)
}
  0xc6   :  { %74 = dma.vmem_to_hbm [thread:$0]  %s72_s1, 16, %s178_s2, [#allocation6]  }
  0xc7   :  { %129 = dma.done.wait [#allocation6], 16  }
  0xc8   :  { %130 = vsyncadd [#allocation6], 4294967280 }
  0xc9   :  { %78 = vsyncpa [#allocation5], 1 }
  0xca   :  { %79 = vsyncpa [#allocation6], 1 }

</bundles_post_ra>
